<compile_context>
chip_gen: v7x
topology: tpu7x:2x2x1
jax: 0.10.0
libtpu: 0.0.40
codegen_flags: <defaults>
</compile_context>

<pallas_src>
import functools
import math

import jax
import jax.numpy as jnp
from jax import lax
from jax.experimental import pallas as pl
from jax.experimental.pallas import tpu as pltpu


def _round_up(n: int, m: int) -> int:
    return pl.cdiv(n, m) * m


def _bf16_epilogue_default() -> bool:
    """bf16 VALU exists on v6e/v7x; keep the f32 epilogue on v5e and older."""
    try:
        kind = jax.devices()[0].device_kind.lower()
    except Exception:
        return True
    return not any(v in kind for v in ("v2", "v3", "v4", "v5"))


# ---------------------------------------------------------------------------
# Kernel: one batch tile of the fused actor+critic MLP.
#   x_ref  : (TB, S)    f32   batch-major input states (no wrapper transpose)
#   w*_ref : fused weights, bf16, stored (out, in)
#   b*_ref : fused biases,  f32,  shape (out, 1)
#   out_ref: (Opad, TB) f32   feature-major, lane-dense; rows [0:A) = policy
#                             logits, row A = value
# ---------------------------------------------------------------------------
def _actor_critic_kernel(x_ref, w1_ref, b1_ref, w2_ref, b2_ref, w3_ref, b3_ref,
                         out_ref, *, bf16_epilogue):
    x = x_ref[...].astype(jnp.bfloat16)                       # (TB, S)

    # Layer 1: (2H, S) x (TB, S)^T -> (2H, TB); contraction of the last dims is
    # fused into the MXU feed (no materialized transpose of x).
    h = lax.dot_general(w1_ref[...], x, (((1,), (1,)), ((), ())),
                        preferred_element_type=jnp.float32)

    def bias_relu(h_f32, b_ref):
        if bf16_epilogue:
            # v6e/v7x: bf16 packs 2/lane on the VPU -> half the VALU elements.
            hb = h_f32.astype(jnp.bfloat16) + b_ref[...].astype(jnp.bfloat16)
            return jnp.maximum(hb, 0)
        # v5e and older: no bf16 VALU path; keep the epilogue in f32.
        return jnp.maximum(h_f32 + b_ref[...], 0.0).astype(jnp.bfloat16)

    h = bias_relu(h, b1_ref)                                   # (2H, TB) bf16
    h = jnp.dot(w2_ref[...], h, preferred_element_type=jnp.float32)
    h = bias_relu(h, b2_ref)                                   # (2H, TB) bf16
    out_ref[...] = (
        jnp.dot(w3_ref[...], h, preferred_element_type=jnp.float32)
        + b3_ref[...]
    )


# ---------------------------------------------------------------------------
# Parameter handling
# ---------------------------------------------------------------------------
def _linear_params(key, in_features, out_features):
    """PyTorch nn.Linear-style uniform(-1/sqrt(fan_in), 1/sqrt(fan_in)) init.

    Weight is returned (in_features, out_features); bias as (1, out_features).
    """
    kw, kb = jax.random.split(key)
    bound = 1.0 / math.sqrt(in_features)
    w = jax.random.uniform(kw, (in_features, out_features), jnp.float32, -bound, bound)
    b = jax.random.uniform(kb, (1, out_features), jnp.float32, -bound, bound)
    return w, b


def init_actor_critic_params(key, state_dim, action_dim, hidden_dim=64):
    keys = jax.random.split(key, 6)
    pw1, pb1 = _linear_params(keys[0], state_dim, hidden_dim)
    pw2, pb2 = _linear_params(keys[1], hidden_dim, hidden_dim)
    pw3, pb3 = _linear_params(keys[2], hidden_dim, action_dim)
    vw1, vb1 = _linear_params(keys[3], state_dim, hidden_dim)
    vw2, vb2 = _linear_params(keys[4], hidden_dim, hidden_dim)
    vw3, vb3 = _linear_params(keys[5], hidden_dim, 1)
    return dict(
        pw1=pw1, pb1=pb1, pw2=pw2, pb2=pb2, pw3=pw3, pb3=pb3,
        vw1=vw1, vb1=vb1, vw2=vw2, vb2=vb2, vw3=vw3, vb3=vb3,
    )


def pack_fused_params(p, state_dim, action_dim, hidden_dim):
    """Fuse the policy and value heads into one 2H-wide chain.

    Call once per parameter update (NOT per forward call).  Weights are stored
    (out, in) and cast to bf16; biases stay f32 as (out, 1).
    """
    H, A = hidden_dim, action_dim
    out_pad = _round_up(A + 1, 8)

    w1 = jnp.concatenate([p["pw1"].T, p["vw1"].T], axis=0)            # (2H, S)
    b1 = jnp.concatenate([p["pb1"], p["vb1"]], axis=1).T              # (2H, 1)

    w2 = jnp.zeros((2 * H, 2 * H), jnp.float32)                       # block-diag
    w2 = w2.at[:H, :H].set(p["pw2"].T).at[H:, H:].set(p["vw2"].T)
    b2 = jnp.concatenate([p["pb2"], p["vb2"]], axis=1).T              # (2H, 1)

    w3 = jnp.zeros((out_pad, 2 * H), jnp.float32)
    w3 = w3.at[:A, :H].set(p["pw3"].T)                                # policy rows
    w3 = w3.at[A, H:].set(p["vw3"][:, 0])                             # value row
    b3 = jnp.zeros((out_pad, 1), jnp.float32)
    b3 = b3.at[:A, 0].set(p["pb3"][0])
    b3 = b3.at[A, 0].set(p["vb3"][0, 0])

    return dict(
        w1=w1.astype(jnp.bfloat16), b1=b1,
        w2=w2.astype(jnp.bfloat16), b2=b2,
        w3=w3.astype(jnp.bfloat16), b3=b3,
        action_dim=A, out_pad=out_pad,
    )


# ---------------------------------------------------------------------------
# Forward wrapper
# ---------------------------------------------------------------------------
def actor_critic_forward(x, fused, *, block_b=4096, bf16_epilogue=None,
                         feature_major_out=False):
    """x: (B, state_dim) f32 (batch-major, as produced by the env/rollout).

    Returns (policy_logits (B, A) f32, value (B, 1) f32), or with
    feature_major_out=True the raw feature-major views ((A, B), (1, B)) so
    downstream consumers can skip the output transpose entirely.
    """
    B, S = x.shape
    A = int(fused["action_dim"])
    out_pad = int(fused["out_pad"])
    H2 = fused["w1"].shape[0]
    if bf16_epilogue is None:
        bf16_epilogue = _bf16_epilogue_default()

    # --- batch tiling: force multiples of 128; >= 2 grid steps when there is
    # enough work so both v7x TensorCores get a share.
    tb_cap = max(128, (int(block_b) // 128) * 128)
    b_pad128 = _round_up(B, 128)
    TB = min(tb_cap, b_pad128)
    if b_pad128 >= 256:
        TB = min(TB, _round_up(b_pad128, 256) // 2)
    n_steps = pl.cdiv(b_pad128, TB)
    B_pad = n_steps * TB

    # Pad the batch only when needed (padded rows carry bias-propagated
    # garbage in the raw slab; they are sliced off below).
    x_in = x if B_pad == B else jnp.pad(x, ((0, B_pad - B), (0, 0)))

    def resident(arr):
        return pl.BlockSpec(arr.shape, lambda i: (0, 0))

    w_args = (fused["w1"], fused["b1"], fused["w2"], fused["b2"],
              fused["w3"], fused["b3"])
    weight_bytes = sum(a.size * a.dtype.itemsize for a in w_args)

    kernel = functools.partial(_actor_critic_kernel, bf16_epilogue=bf16_epilogue)

    out_t = pl.pallas_call(
        kernel,
        out_shape=jax.ShapeDtypeStruct((out_pad, B_pad), jnp.float32),
        grid=(n_steps,),
        in_specs=[pl.BlockSpec((TB, S), lambda i: (i, 0))]
                 + [resident(a) for a in w_args],
        out_specs=pl.BlockSpec((out_pad, TB), lambda i: (0, i)),
        compiler_params=pltpu.CompilerParams(
            dimension_semantics=("parallel",)),
        cost_estimate=pl.CostEstimate(
            flops=2 * B_pad * (S * H2 + H2 * H2 + H2 * out_pad),
            transcendentals=0,
            bytes_accessed=B_pad * S * 4 + out_pad * B_pad * 4 + weight_bytes,
        ),
    )(x_in, *w_args)

    if feature_major_out:
        return out_t[:A, :B], out_t[A:A + 1, :B]
    # TODO(synk): for large rollout batches, consume the feature-major slab
    # directly (feature_major_out=True) to avoid this extra transpose pass.
    policy = out_t[:A, :B].T
    value = out_t[A:A + 1, :B].T
    return policy, value


# ---------------------------------------------------------------------------
# Pure-JAX reference (same bf16 matmul-operand rounding as the kernel)
# ---------------------------------------------------------------------------
def _reference_forward(x, p):
    def rd(a):
        return a.astype(jnp.bfloat16).astype(jnp.float32)

    def mlp(w1, b1, w2, b2, w3, b3):
        h = jnp.maximum(rd(x) @ rd(w1) + b1, 0.0)
        h = jnp.maximum(rd(h) @ rd(w2) + b2, 0.0)
        return rd(h) @ rd(w3) + b3

    return (
        mlp(p["pw1"], p["pb1"], p["pw2"], p["pb2"], p["pw3"], p["pb3"]),
        mlp(p["vw1"], p["vb1"], p["vw2"], p["vb2"], p["vw3"], p["vb3"]),
    )


if __name__ == "__main__":
    # LunarLander-v2: state_dim=8, action_dim=4.
    state_dim, action_dim, hidden_dim = 8, 4, 64

    key = jax.random.PRNGKey(0)
    k_params, k_x1, k_x2 = jax.random.split(key, 3)
    params = init_actor_critic_params(k_params, state_dim, action_dim, hidden_dim)
    fused = pack_fused_params(params, state_dim, action_dim, hidden_dim)

    # Small single-tile case and a multi-step-grid (padded) case.
    for batch, kx in ((2, k_x1), (384, k_x2)):
        x = jax.random.normal(kx, (batch, state_dim), jnp.float32)
        policy_logits, value = jax.block_until_ready(
            actor_critic_forward(x, fused))

        ref_policy, ref_value = _reference_forward(x, params)
        assert policy_logits.shape == (batch, action_dim)
        assert value.shape == (batch, 1)
        assert jnp.allclose(policy_logits, ref_policy, atol=2e-2, rtol=2e-2), (
            batch, float(jnp.max(jnp.abs(policy_logits - ref_policy))))
        assert jnp.allclose(value, ref_value, atol=2e-2, rtol=2e-2), (
            batch, float(jnp.max(jnp.abs(value - ref_value))))

    print("KERNEL_OK")
</pallas_src>

<mosaic_0001>
module attributes {stable_mosaic.version = 11 : i64} {
  func.func @_actor_critic_kernel(%arg0: i32, %arg1: memref<128x8xf32, #tpu.memory_space<vmem>>, %arg2: memref<128x8xbf16, #tpu.memory_space<vmem>>, %arg3: memref<128x1xf32, #tpu.memory_space<vmem>>, %arg4: memref<128x128xbf16, #tpu.memory_space<vmem>>, %arg5: memref<128x1xf32, #tpu.memory_space<vmem>>, %arg6: memref<8x128xbf16, #tpu.memory_space<vmem>>, %arg7: memref<8x1xf32, #tpu.memory_space<vmem>>, %arg8: memref<8x128xf32, #tpu.memory_space<vmem>>) attributes {dimension_semantics = [#tpu.dimension_semantics<parallel>], iteration_bounds = array<i64: 1>, scalar_prefetch = 0 : i64, scratch_operands = 0 : i64, tpu.core_type = #tpu.core_type<tc>, window_params = [{transform_indices = @transform_0, window_bounds = array<i64: 128, 8>}, {pipeline_mode = #tpu.pipeline_mode<synchronous>, transform_indices = @transform_1, window_bounds = array<i64: 128, 8>}, {pipeline_mode = #tpu.pipeline_mode<synchronous>, transform_indices = @transform_2, window_bounds = array<i64: 128, 1>}, {pipeline_mode = #tpu.pipeline_mode<synchronous>, transform_indices = @transform_3, window_bounds = array<i64: 128, 128>}, {pipeline_mode = #tpu.pipeline_mode<synchronous>, transform_indices = @transform_4, window_bounds = array<i64: 128, 1>}, {pipeline_mode = #tpu.pipeline_mode<synchronous>, transform_indices = @transform_5, window_bounds = array<i64: 8, 128>}, {pipeline_mode = #tpu.pipeline_mode<synchronous>, transform_indices = @transform_6, window_bounds = array<i64: 8, 1>}, {transform_indices = @transform_7, window_bounds = array<i64: 8, 128>}]} {
    %c0 = arith.constant 0 : index
    %c0_0 = arith.constant 0 : index
    %0 = vector.load %arg1[%c0, %c0_0] : memref<128x8xf32, #tpu.memory_space<vmem>>, vector<128x8xf32>
    %1 = arith.truncf %0 : vector<128x8xf32> to vector<128x8xbf16>
    %c0_1 = arith.constant 0 : index
    %c0_2 = arith.constant 0 : index
    %2 = vector.load %arg2[%c0_1, %c0_2] : memref<128x8xbf16, #tpu.memory_space<vmem>>, vector<128x8xbf16>
    %cst = arith.constant dense<0.000000e+00> : vector<128x128xf32>
    %3 = tpu.matmul %2, %1, %cst {dimension_numbers = #tpu.dot_dimension_numbers<[1], [1], [0], [0], [0, 0, 1, 0], [], []>} : vector<128x8xbf16>, vector<128x8xbf16>, vector<128x128xf32> -> vector<128x128xf32>
    %4 = arith.truncf %3 : vector<128x128xf32> to vector<128x128xbf16>
    %c0_3 = arith.constant 0 : index
    %c0_4 = arith.constant 0 : index
    %5 = vector.load %arg3[%c0_3, %c0_4] : memref<128x1xf32, #tpu.memory_space<vmem>>, vector<128x1xf32>
    %6 = arith.truncf %5 : vector<128x1xf32> to vector<128x1xbf16>
    %7 = vector.broadcast %6 : vector<128x1xbf16> to vector<128x128xbf16>
    %8 = arith.addf %4, %7 : vector<128x128xbf16>
    %cst_5 = arith.constant 0.000000e+00 : bf16
    %9 = vector.broadcast %cst_5 : bf16 to vector<128x128xbf16>
    %10 = arith.maximumf %8, %9 : vector<128x128xbf16>
    %c0_6 = arith.constant 0 : index
    %c0_7 = arith.constant 0 : index
    %11 = vector.load %arg4[%c0_6, %c0_7] : memref<128x128xbf16, #tpu.memory_space<vmem>>, vector<128x128xbf16>
    %cst_8 = arith.constant dense<0.000000e+00> : vector<128x128xf32>
    %12 = tpu.matmul %11, %10, %cst_8 {dimension_numbers = #tpu.dot_dimension_numbers<[1], [0], [0], [1], [0, 0, 1, 1], [], []>} : vector<128x128xbf16>, vector<128x128xbf16>, vector<128x128xf32> -> vector<128x128xf32>
    %13 = arith.truncf %12 : vector<128x128xf32> to vector<128x128xbf16>
    %c0_9 = arith.constant 0 : index
    %c0_10 = arith.constant 0 : index
    %14 = vector.load %arg5[%c0_9, %c0_10] : memref<128x1xf32, #tpu.memory_space<vmem>>, vector<128x1xf32>
    %15 = arith.truncf %14 : vector<128x1xf32> to vector<128x1xbf16>
    %16 = vector.broadcast %15 : vector<128x1xbf16> to vector<128x128xbf16>
    %17 = arith.addf %13, %16 : vector<128x128xbf16>
    %cst_11 = arith.constant 0.000000e+00 : bf16
    %18 = vector.broadcast %cst_11 : bf16 to vector<128x128xbf16>
    %19 = arith.maximumf %17, %18 : vector<128x128xbf16>
    %c0_12 = arith.constant 0 : index
    %c0_13 = arith.constant 0 : index
    %20 = vector.load %arg6[%c0_12, %c0_13] : memref<8x128xbf16, #tpu.memory_space<vmem>>, vector<8x128xbf16>
    %cst_14 = arith.constant dense<0.000000e+00> : vector<8x128xf32>
    %21 = tpu.matmul %20, %19, %cst_14 {dimension_numbers = #tpu.dot_dimension_numbers<[1], [0], [0], [1], [0, 0, 1, 1], [], []>} : vector<8x128xbf16>, vector<128x128xbf16>, vector<8x128xf32> -> vector<8x128xf32>
    %c0_15 = arith.constant 0 : index
    %c0_16 = arith.constant 0 : index
    %22 = vector.load %arg7[%c0_15, %c0_16] : memref<8x1xf32, #tpu.memory_space<vmem>>, vector<8x1xf32>
    %23 = vector.broadcast %22 : vector<8x1xf32> to vector<8x128xf32>
    %24 = arith.addf %21, %23 : vector<8x128xf32>
    %c0_17 = arith.constant 0 : index
    %c0_18 = arith.constant 0 : index
    %25 = vector.load %arg8[%c0_17, %c0_18] : memref<8x128xf32, #tpu.memory_space<vmem>>, vector<8x128xf32>
    tpu.vector_store %arg8[%c0_17, %c0_18], %24 {strides = array<i32>} : memref<8x128xf32, #tpu.memory_space<vmem>>, vector<8x128xf32>,
    return
  }
  func.func @transform_0(%arg0: i32) -> (i32, i32) {
    %c0_i32 = arith.constant 0 : i32
    %c0_i32_0 = arith.constant 0 : i32
    return %arg0, %c0_i32 : i32, i32
  }
  func.func @transform_1(%arg0: i32) -> (i32, i32) {
    %c0_i32 = arith.constant 0 : i32
    %c0_i32_0 = arith.constant 0 : i32
    %c0_i32_1 = arith.constant 0 : i32
    return %c0_i32, %c0_i32_0 : i32, i32
  }
  func.func @transform_2(%arg0: i32) -> (i32, i32) {
    %c0_i32 = arith.constant 0 : i32
    %c0_i32_0 = arith.constant 0 : i32
    %c0_i32_1 = arith.constant 0 : i32
    return %c0_i32, %c0_i32_0 : i32, i32
  }
  func.func @transform_3(%arg0: i32) -> (i32, i32) {
    %c0_i32 = arith.constant 0 : i32
    %c0_i32_0 = arith.constant 0 : i32
    %c0_i32_1 = arith.constant 0 : i32
    return %c0_i32, %c0_i32_0 : i32, i32
  }
  func.func @transform_4(%arg0: i32) -> (i32, i32) {
    %c0_i32 = arith.constant 0 : i32
    %c0_i32_0 = arith.constant 0 : i32
    %c0_i32_1 = arith.constant 0 : i32
    return %c0_i32, %c0_i32_0 : i32, i32
  }
  func.func @transform_5(%arg0: i32) -> (i32, i32) {
    %c0_i32 = arith.constant 0 : i32
    %c0_i32_0 = arith.constant 0 : i32
    %c0_i32_1 = arith.constant 0 : i32
    return %c0_i32, %c0_i32_0 : i32, i32
  }
  func.func @transform_6(%arg0: i32) -> (i32, i32) {
    %c0_i32 = arith.constant 0 : i32
    %c0_i32_0 = arith.constant 0 : i32
    %c0_i32_1 = arith.constant 0 : i32
    return %c0_i32, %c0_i32_0 : i32, i32
  }
  func.func @transform_7(%arg0: i32) -> (i32, i32) {
    %c0_i32 = arith.constant 0 : i32
    %c0_i32_0 = arith.constant 0 : i32
    return %c0_i32, %arg0 : i32, i32
  }
}

</mosaic_0001>

<bundles_post_ra>
// kernel: tpu_custom_call.1
= control target key start
LH: loop header
LB: loop body
LE: loop exit
PB: predicated region body
PF: predicated region fallthrough
CT: control target
= control target key end

     0   :  { %vm108_vm0 = vcmask 64512   ;;  %v856_v5 = vmov 0   ;;  %s1161_s0 = inlined_call_operand.vmem [shape: f32[128,8], index: 0, kind: input, shape index: {}]   ;;  %s1162_s1 = inlined_call_operand.vmem [shape: bf16[128,8], index: 1, kind: input, shape index: {}]   ;;  %s1163_s2 = inlined_call_operand.vmem [shape: f32[128,1], index: 2, kind: input, shape index: {}]   ;;  %s1164_s3 = inlined_call_operand.vmem [shape: bf16[128,128], index: 3, kind: input, shape index: {}]   ;;  %s1165_s4 = inlined_call_operand.vmem [shape: f32[128,1], index: 4, kind: input, shape index: {}]   ;;  %s1166_s5 = inlined_call_operand.vmem [shape: bf16[8,128], index: 5, kind: input, shape index: {}]   ;;  %s1167_s6 = inlined_call_operand.vmem [shape: f32[8,1], index: 6, kind: input, shape index: {}]   ;;  %s1168_s7 = inlined_call_operand.hbm [shape: f32[8,128], index: 7, kind: output, shape index: {}]  }
   0x1   :  { %v28_v0 = vld [vmem:[%s1161_s0] sm:$0xff]  ;;  %v29_v1 = vld [vmem:[%s1161_s0 + $0x8] sm:$0xff]  ;;  %v30_v2 = vld [vmem:[%s1161_s0 + $0x10] sm:$0xff]  ;;  %814 = vset.pattern.permute.xlu0 %v856_v5  ;;  %815 = vset.pattern.permute.xlu1 %v856_v5 }
   0x2   :  { %v44_v3 = vpack.c.bf16 %v29_v1, %v28_v0  ;;  %v31_v4 = vld [vmem:[%s1161_s0 + $0x18] sm:$0xff]  ;;  %v32_v8 = vld [vmem:[%s1161_s0 + $0x20] sm:$0xff]  ;;  %v33_v9 = vld [vmem:[%s1161_s0 + $0x28] sm:$0xff] }
   0x3   :  { %v45_v6 = vpack.c.bf16 %v31_v4, %v30_v2  ;;  %v816_v10 = vld [vmem:[%s1162_s1] sm:$0xff]   ;;  %v46_v12 = vpack.c.bf16 %v33_v9, %v32_v8  ;;  %v34_v13 = vld [vmem:[%s1161_s0 + $0x30] sm:$0xff]  ;;  %v263_v15 = vld [vmem:[%s1163_s2 + $0x8] sm:$0xff] }
   0x4   :  { %802 = vmatprep.subr.msk.bf16.mxu0 %vm108_vm0, %v44_v3  ;;  %v134_v7 = vsel %vm108_vm0, %v44_v3, 0  ;;  %734 = vmatprep.mubr.msk.bf16.mxu0 %vm108_vm0, %v816_v10  ;;  %v262_v14 = vld [vmem:[%s1163_s2] sm:$0xff]  ;;  %v35_v16 = vld [vmem:[%s1161_s0 + $0x38] sm:$0xff]  ;;  %v264_v18 = vld [vmem:[%s1163_s2 + $0x10] sm:$0xff] }
   0x5   :  { %719 = vmatpush3.bf16.xpose.msra.mxu0 %v134_v7  ;;  %v137_v11 = vsel %vm108_vm0, %v45_v6, 0  ;;  %v278_v17 = vpack.c.bf16 %v263_v15, %v262_v14  ;;  %v265_v19 = vld [vmem:[%s1163_s2 + $0x18] sm:$0xff]  ;;  %v266_v20 = vld [vmem:[%s1163_s2 + $0x20] sm:$0xff]  ;;  %v267_v21 = vld [vmem:[%s1163_s2 + $0x28] sm:$0xff]  ;;  %v140_v25 = vsel %vm108_vm0, %v46_v12, 0  ;;  %v47_v26 = vpack.c.bf16 %v35_v16, %v34_v13 }
   0x6   :  { %803 = vmatprep.subr.msk.bf16.mxu0 %vm108_vm0, %v45_v6  ;;  %v279_v22 = vpack.c.bf16 %v265_v19, %v264_v18  ;;  %v280_v23 = vpack.c.bf16 %v267_v21, %v266_v20  ;;  %v268_v24 = vld [vmem:[%s1163_s2 + $0x30] sm:$0xff]  ;;  %v270_v27 = vld [vmem:[%s1163_s2 + $0x40] sm:$0xff]  ;;  %v271_v28 = vld [vmem:[%s1163_s2 + $0x48] sm:$0xff] }
   0x7   :  { %288 = vperm.xlu0 %814, %v278_v17   ;;  %v269_v29 = vld [vmem:[%s1163_s2 + $0x38] sm:$0xff]  ;;  %v272_v31 = vld [vmem:[%s1163_s2 + $0x50] sm:$0xff]  ;;  %v282_v33 = vpack.c.bf16 %v271_v28, %v270_v27  ;;  %v274_v34 = vld [vmem:[%s1163_s2 + $0x60] sm:$0xff]  ;;  %v143_v42 = vsel %vm108_vm0, %v47_v26, 0 }
   0x8   :  { %298 = vperm.xlu1 %815, %v280_v23   ;;  %v281_v30 = vpack.c.bf16 %v269_v29, %v268_v24  ;;  %v273_v32 = vld [vmem:[%s1163_s2 + $0x58] sm:$0xff]  ;;  %v275_v35 = vld [vmem:[%s1163_s2 + $0x68] sm:$0xff]  ;;  %v36_v36 = vld [vmem:[%s1161_s0 + $0x40] sm:$0xff] }
   0x9   :  { %v37_v37 = vld [vmem:[%s1161_s0 + $0x48] sm:$0xff]  ;;  %v283_v38 = vpack.c.bf16 %v273_v32, %v272_v31  ;;  %v511_v39 = vld [vmem:[%s1165_s4] sm:$0xff]  ;;  %v276_v40 = vld [vmem:[%s1163_s2 + $0x70] sm:$0xff]  ;;  %v284_v43 = vpack.c.bf16 %v275_v35, %v274_v34 }
   0xa   :  { %v277_v41 = vld [vmem:[%s1163_s2 + $0x78] sm:$0xff]  ;;  %v512_v44 = vld [vmem:[%s1165_s4 + $0x8] sm:$0xff]  ;;  %v48_v45 = vpack.c.bf16 %v37_v37, %v36_v36  ;;  %v513_v46 = vld [vmem:[%s1165_s4 + $0x10] sm:$0xff] }
   0xb   :  { %293 = vperm.xlu0 %814, %v279_v22   ;;  %v514_v47 = vld [vmem:[%s1165_s4 + $0x18] sm:$0xff]  ;;  %v285_v48 = vpack.c.bf16 %v277_v41, %v276_v40  ;;  %v515_v49 = vld [vmem:[%s1165_s4 + $0x20] sm:$0xff]  ;;  %v516_v50 = vld [vmem:[%s1165_s4 + $0x28] sm:$0xff]  ;;  %v527_v51 = vpack.c.bf16 %v512_v44, %v511_v39 }
   0xc   :  { %303 = vperm.xlu1 %815, %v281_v30  }
   0xd   :  { %721 = vmatpush3.bf16.xpose.msra.mxu0 %v137_v11 }
   0xe   :  { %804 = vmatprep.subr.msk.bf16.mxu0 %vm108_vm0, %v46_v12 }
   0xf   :  { %308 = vperm.xlu0 %814, %v282_v33  }
  0x10   :  { %313 = vperm.xlu1 %815, %v283_v38  }
  0x13   :  { %318 = vperm.xlu0 %814, %v284_v43  }
  0x15   :  { %723 = vmatpush3.bf16.xpose.msra.mxu0 %v140_v25 }
  0x16   :  { %805 = vmatprep.subr.msk.bf16.mxu0 %vm108_vm0, %v47_v26 }
  0x1d   :  { %725 = vmatpush3.bf16.xpose.msra.mxu0 %v143_v42 }
  0x1e   :  { %806 = vmatprep.subr.msk.bf16.mxu0 %vm108_vm0, %v48_v45 }
  0x1f   :  { %12 = vsyncpa [#allocation3], 0  ;;  %v38_v52 = vld [vmem:[%s1161_s0 + $0x50] sm:$0xff]  ;;  %v39_v53 = vld [vmem:[%s1161_s0 + $0x58] sm:$0xff]  ;;  %323 = vperm.xlu1 %815, %v285_v48   ;;  %v528_v54 = vpack.c.bf16 %v514_v47, %v513_v46  ;;  %537 = vperm.xlu0 %814, %v527_v51   ;;  %v529_v57 = vpack.c.bf16 %v516_v50, %v515_v49  ;;  %v146_v58 = vsel %vm108_vm0, %v48_v45, 0  ;;  %vm858_vm1 = vmmov 0  }
  0x20   :  { %v517_v55 = vld [vmem:[%s1165_s4 + $0x30] sm:$0xff]  ;;  %v518_v56 = vld [vmem:[%s1165_s4 + $0x38] sm:$0xff]  ;;  %v49_v59 = vpack.c.bf16 %v39_v53, %v38_v52  ;;  %v519_v60 = vld [vmem:[%s1165_s4 + $0x40] sm:$0xff]  ;;  %s859_s8 = smov [#allocation2]  }
  0x21   :  { %v520_v61 = vld [vmem:[%s1165_s4 + $0x48] sm:$0xff]  ;;  %v530_v62 = vpack.c.bf16 %v518_v56, %v517_v55  ;;  %v521_v63 = vld [vmem:[%s1165_s4 + $0x50] sm:$0xff]  ;;  %v522_v0 = vld [vmem:[%s1165_s4 + $0x58] sm:$0xff] }
  0x22   :  { %v531_v1 = vpack.c.bf16 %v520_v61, %v519_v60  ;;  %v523_v2 = vld [vmem:[%s1165_s4 + $0x60] sm:$0xff]  ;;  %v524_v3 = vld [vmem:[%s1165_s4 + $0x68] sm:$0xff]  ;;  %v532_v7 = vpack.c.bf16 %v522_v0, %v521_v63  ;;  %v525_v8 = vld [vmem:[%s1165_s4 + $0x70] sm:$0xff]  ;;  %v149_v11 = vsel %vm108_vm0, %v49_v59, 0 }
  0x23   :  { %542 = vperm.xlu1 %815, %v528_v54   ;;  %547 = vperm.xlu0 %814, %v529_v57   ;;  %v40_v4 = vld [vmem:[%s1161_s0 + $0x60] sm:$0xff]  ;;  %v41_v6 = vld [vmem:[%s1161_s0 + $0x68] sm:$0xff]  ;;  %v526_v9 = vld [vmem:[%s1165_s4 + $0x78] sm:$0xff]  ;;  %v533_v10 = vpack.c.bf16 %v524_v3, %v523_v2 }
  0x24   :  { %v50_v12 = vpack.c.bf16 %v41_v6, %v40_v4  ;;  %v534_v13 = vpack.c.bf16 %v526_v9, %v525_v8  ;;  %v592_v14 = vld [vmem:[%s1167_s6] sm:$0xff]  ;;  %v42_v15 = vld [vmem:[%s1161_s0 + $0x70] sm:$0xff]  ;;  %v43_v16 = vld [vmem:[%s1161_s0 + $0x78] sm:$0xff]  ;;  %s645_s0 = sshll.u32 %s859_s8, 4  ;;  %s646_s0 = int_to_ptr.vmem [resolvable:$true] %s645_s0 }
  0x25   :  { %727 = vmatpush3.bf16.xpose.msra.mxu0 %v146_v58  ;;  %v51_v18 = vpack.c.bf16 %v43_v16, %v42_v15  ;;  %v817_v20 = vld [vmem:[%s1162_s1 + $0x8] sm:$0xff]   ;;  %v818_v21 = vld [vmem:[%s1162_s1 + $0x10] sm:$0xff]   ;;  %v819_v22 = vld [vmem:[%s1162_s1 + $0x18] sm:$0xff]   ;;  %s832_s9 = scalar_lea.vmem %s646_s0, 128  ;;  %p837_p1 = scmp.lt.s32.totalorder %s646_s0, %s646_s0 }
  0x26   :  { %807 = vmatprep.subr.msk.bf16.mxu0 %vm108_vm0, %v49_v59  ;;  %v152_v17 = vsel %vm108_vm0, %v50_v12, 0  ;;  %v820_v23 = vld [vmem:[%s1162_s1 + $0x20] sm:$0xff]   ;;  %v821_v24 = vld [vmem:[%s1162_s1 + $0x28] sm:$0xff]   ;;  %v822_v25 = vld [vmem:[%s1162_s1 + $0x30] sm:$0xff]   ;;  %p833_p0 = scmp.ne.s32.totalorder %s646_s0, %s832_s9  ;;  %p838_p2 = scmp.lt.s32.totalorder %s832_s9, %s832_s9 }
  0x27   :  { %552 = vperm.xlu1 %815, %v530_v62   ;;  %557 = vperm.xlu0 %814, %v531_v1   ;;  %v155_v19 = vsel %vm108_vm0, %v51_v18, 0  ;;  %v823_v26 = vld [vmem:[%s1162_s1 + $0x38] sm:$0xff]   ;;  %v824_v27 = vld [vmem:[%s1164_s3] sm:$0xff]  }
  0x28   :  { %766 = vmatprep.mubr.bf16.mxu1 %v824_v27  ;;  %v827_v15 = vld [vmem:[%s1164_s3 + $0x18] sm:$0xff]   ;;  %v828_v16 = vld [vmem:[%s1164_s3 + $0x20] sm:$0xff]   ;;  %p839_p3 = por %p838_p2, %p837_p1 }
  0x2a   :  { %p840_p4 = pnand %p839_p3, %p833_p0 }
  0x2b   :  { %562 = vperm.xlu1 %815, %v532_v7   ;;  %567 = vperm.xlu0 %814, %v533_v10  }
  0x2d   :  { %729 = vmatpush3.bf16.xpose.msra.mxu0 %v149_v11 }
  0x2e   :  { %808 = vmatprep.subr.msk.bf16.mxu0 %vm108_vm0, %v50_v12 }
  0x2f   :  { %572 = vperm.xlu1 %815, %v534_v13   ;;  %595 = vperm.xlu0 %814, %v592_v14   ;;  %v825_v13 = vld [vmem:[%s1164_s3 + $0x8] sm:$0xff]   ;;  %v826_v14 = vld [vmem:[%s1164_s3 + $0x10] sm:$0xff]  }
  0x35   :  { %731 = vmatpush3.bf16.xpose.msra.mxu0 %v152_v17  ;;  %v829_v17 = vld [vmem:[%s1164_s3 + $0x28] sm:$0xff]  }
  0x36   :  { %809 = vmatprep.subr.msk.bf16.mxu0 %vm108_vm0, %v51_v18  ;;  %v830_v18 = vld [vmem:[%s1164_s3 + $0x30] sm:$0xff]  }
  0x3d   :  { %733 = vmatpush3.bf16.xpose.msra.mxu0 %v155_v19  ;;  %v831_v19 = vld [vmem:[%s1164_s3 + $0x38] sm:$0xff]  }
  0x44   :  { %735 = vmatmul.mubr.msk.bf16.vlgmr.msra.gmra.mrb[0].mxu0 %vm108_vm0, %v817_v20  ;;  %v857_v20 = vmov 0.0  }
  0x45   :  { %738 = vmatprep.mubr.msk.bf16.mxu0 %vm108_vm0, %v818_v21 }
  0x4c   :  { %739 = vmatmul.mubr.msk.bf16.gmra.mrb[4].mxu0 %vm108_vm0, %v819_v22 }
  0x4d   :  { %742 = vmatprep.mubr.msk.bf16.mxu0 %vm108_vm0, %v820_v23 }
  0x54   :  { %743 = vmatmul.mubr.msk.bf16.gmra.mrb[8].mxu0 %vm108_vm0, %v821_v24 }
  0x55   :  { %746 = vmatprep.mubr.msk.bf16.mxu0 %vm108_vm0, %v822_v25 }
  0x5c   :  { %747 = vmatmul.mubr.msk.bf16.gmra.mrb[12].mxu0 %vm108_vm0, %v823_v26 }
  0x86   :  { %v289_v28 = vpop.permute.xlu0 %288 }
  0x87   :  { %v299_v38 = vpop.permute.xlu1 %298 }
  0x8a   :  { %v294_v35 = vpop.permute.xlu0 %293 }
  0x8b   :  { %v304_v47 = vpop.permute.xlu1 %303 }
  0x8e   :  { %v309_v58 = vpop.permute.xlu0 %308 }
  0x8f   :  { %v314_v59 = vpop.permute.xlu1 %313 }
  0x92   :  { %v319_v7 = vpop.permute.xlu0 %318 }
  0x9e   :  { %v324_v8 = vpop.permute.xlu1 %323  ;;  %v538_v27 = vpop.permute.xlu0 %537 }
 0x117   :  { %v736_v29 = vpop.f32.mrb[0].mxu0 }
 0x118   :  { %v191_v30 = vpop.f32.mrb[1].mxu0 }
 0x119   :  { %v737_v31 = vpop.f32.mrb[2].mxu0 }
 0x11a   :  { %v255_v32 = vpack.c.bf16 %v737_v31, %v736_v29  ;;  %v194_v33 = vpop.f32.mrb[3].mxu0  ;;  %v543_v29 = vpop.permute.xlu1 %542 }
 0x11b   :  { %v254_v34 = vpack.c.bf16 %v194_v33, %v191_v30 }
 0x11c   :  { %v327_v36 = vadd.bf16 %v294_v35, %v255_v32 }
 0x11d   :  { %v326_v37 = vadd.bf16 %v289_v28, %v254_v34 }
 0x11e   :  { %v335_v43 = vmax.bf16 %v856_v5, %v327_v36 }
 0x11f   :  { %v740_v39 = vpop.f32.mrb[4].mxu0  ;;  %v334_v40 = vmax.bf16 %v856_v5, %v326_v37 }
 0x120   :  { %v207_v41 = vpop.f32.mrb[5].mxu0 }
 0x121   :  { %v741_v42 = vpop.f32.mrb[6].mxu0  ;;  %750 = vmatprep.subr.bf16.mxu1 %v334_v40 }
 0x122   :  { %v257_v44 = vpack.c.bf16 %v741_v42, %v740_v39  ;;  %v210_v45 = vpop.f32.mrb[7].mxu0  ;;  %751 = vmatpush3.bf16.msra.mxu1 %v334_v40  ;;  %v548_v39 = vpop.permute.xlu0 %547 }
 0x123   :  { %v256_v46 = vpack.c.bf16 %v210_v45, %v207_v41  ;;  %752 = vmatprep.subr.bf16.mxu1 %v335_v43  ;;  %v553_v41 = vpop.permute.xlu1 %552 }
 0x124   :  { %v329_v48 = vadd.bf16 %v304_v47, %v257_v44 }
 0x125   :  { %v328_v49 = vadd.bf16 %v299_v38, %v256_v46 }
 0x126   :  { %753 = vmatpush3.bf16.msra.mxu1 %v335_v43  ;;  %v337_v54 = vmax.bf16 %v856_v5, %v329_v48 }
 0x127   :  { %v744_v50 = vpop.f32.mrb[8].mxu0  ;;  %v336_v51 = vmax.bf16 %v856_v5, %v328_v49 }
 0x128   :  { %v223_v52 = vpop.f32.mrb[9].mxu0 }
 0x129   :  { %v745_v53 = vpop.f32.mrb[10].mxu0  ;;  %754 = vmatprep.subr.bf16.mxu1 %v336_v51 }
 0x12a   :  { %v259_v55 = vpack.c.bf16 %v745_v53, %v744_v50  ;;  %v226_v56 = vpop.f32.mrb[11].mxu0  ;;  %755 = vmatpush3.bf16.msra.mxu1 %v336_v51  ;;  %v558_v51 = vpop.permute.xlu0 %557 }
 0x12b   :  { %v258_v57 = vpack.c.bf16 %v226_v56, %v223_v52  ;;  %756 = vmatprep.subr.bf16.mxu1 %v337_v54  ;;  %v563_v53 = vpop.permute.xlu1 %562 }
 0x12c   :  { %v331_v60 = vadd.bf16 %v314_v59, %v259_v55 }
 0x12d   :  { %v330_v61 = vadd.bf16 %v309_v58, %v258_v57 }
 0x12e   :  { %757 = vmatpush3.bf16.msra.mxu1 %v337_v54  ;;  %v339_v2 = vmax.bf16 %v856_v5, %v331_v60 }
 0x12f   :  { %v748_v62 = vpop.f32.mrb[12].mxu0  ;;  %v338_v63 = vmax.bf16 %v856_v5, %v330_v61 }
 0x130   :  { %v239_v0 = vpop.f32.mrb[13].mxu0 }
 0x131   :  { %v749_v1 = vpop.f32.mrb[14].mxu0  ;;  %758 = vmatprep.subr.bf16.mxu1 %v338_v63 }
 0x132   :  { %v261_v3 = vpack.c.bf16 %v749_v1, %v748_v62  ;;  %v242_v4 = vpop.f32.mrb[15].mxu0  ;;  %759 = vmatpush3.bf16.msra.mxu1 %v338_v63  ;;  %v568_v63 = vpop.permute.xlu0 %567 }
 0x133   :  { %v260_v6 = vpack.c.bf16 %v242_v4, %v239_v0  ;;  %760 = vmatprep.subr.bf16.mxu1 %v339_v2  ;;  %v573_v1 = vpop.permute.xlu1 %572 }
 0x134   :  { %v333_v9 = vadd.bf16 %v324_v8, %v261_v3 }
 0x135   :  { %v332_v10 = vadd.bf16 %v319_v7, %v260_v6  ;;  %v591_v6 = vld [vmem:[%s1166_s5] sm:$0xf] }
 0x136   :  { %761 = vmatpush3.bf16.msra.mxu1 %v339_v2  ;;  %v341_v12 = vmax.bf16 %v856_v5, %v333_v9  ;;  %v596_v7 = vpop.permute.xlu0 %595 }
 0x137   :  { %v340_v11 = vmax.bf16 %v856_v5, %v332_v10 }
 0x139   :  { %762 = vmatprep.subr.bf16.mxu1 %v340_v11 }
 0x13a   :  { %763 = vmatpush3.bf16.msra.mxu1 %v340_v11 }
 0x13b   :  { %764 = vmatprep.subr.bf16.mxu1 %v341_v12 }
 0x13e   :  { %765 = vmatpush3.bf16.msra.mxu1 %v341_v12 }
 0x13f   :  { %782 = vmatprep.subr.bf16.mxu1 %v857_v20 }
 0x141   :  { %767 = vmatmul.mubr.bf16.vlgmr.msra.gmra.mrb[0].mxu1 %v825_v13 }
 0x142   :  { %770 = vmatprep.mubr.bf16.mxu1 %v826_v14 }
 0x149   :  { %771 = vmatmul.mubr.bf16.gmra.mrb[4].mxu1 %v827_v15 }
 0x14a   :  { %774 = vmatprep.mubr.bf16.mxu1 %v828_v16 }
 0x151   :  { %775 = vmatmul.mubr.bf16.gmra.mrb[8].mxu1 %v829_v17 }
 0x152   :  { %778 = vmatprep.mubr.bf16.mxu1 %v830_v18 }
 0x159   :  { %779 = vmatmul.mubr.bf16.gmra.mrb[12].mxu1 %v831_v19 }
 0x15a   :  { %798 = vmatprep.mubr.msk.bf16.mxu1 %vm858_vm1, %v857_v20 }
 0x214   :  { %v768_v21 = vpop.f32.mrb[0].mxu1 }
 0x215   :  { %v440_v22 = vpop.f32.mrb[1].mxu1 }
 0x216   :  { %v769_v23 = vpop.f32.mrb[2].mxu1 }
 0x217   :  { %v504_v24 = vpack.c.bf16 %v769_v23, %v768_v21  ;;  %v443_v25 = vpop.f32.mrb[3].mxu1 }
 0x218   :  { %v503_v26 = vpack.c.bf16 %v443_v25, %v440_v22 }
 0x219   :  { %v576_v30 = vadd.bf16 %v543_v29, %v504_v24 }
 0x21a   :  { %v575_v28 = vadd.bf16 %v538_v27, %v503_v26 }
 0x21b   :  { %v584_v37 = vmax.bf16 %v856_v5, %v576_v30 }
 0x21c   :  { %v583_v31 = vmax.bf16 %v856_v5, %v575_v28  ;;  %v772_v32 = vpop.f32.mrb[4].mxu1 }
 0x21d   :  { %v456_v33 = vpop.f32.mrb[5].mxu1 }
 0x21e   :  { %v773_v34 = vpop.f32.mrb[6].mxu1  ;;  %783 = vmatpush3.bf16.msra.mxu1 %v583_v31 }
 0x21f   :  { %v506_v35 = vpack.c.bf16 %v773_v34, %v772_v32  ;;  %v459_v36 = vpop.f32.mrb[7].mxu1  ;;  %784 = vmatprep.subr.bf16.mxu1 %v857_v20 }
 0x220   :  { %v505_v38 = vpack.c.bf16 %v459_v36, %v456_v33 }
 0x221   :  { %v578_v42 = vadd.bf16 %v553_v41, %v506_v35 }
 0x222   :  { %v577_v40 = vadd.bf16 %v548_v39, %v505_v38  ;;  %785 = vmatpush3.bf16.msra.mxu1 %v584_v37 }
 0x223   :  { %786 = vmatprep.subr.bf16.mxu1 %v857_v20  ;;  %v586_v49 = vmax.bf16 %v856_v5, %v578_v42 }
 0x224   :  { %v585_v43 = vmax.bf16 %v856_v5, %v577_v40  ;;  %v776_v44 = vpop.f32.mrb[8].mxu1 }
 0x225   :  { %v472_v45 = vpop.f32.mrb[9].mxu1 }
 0x226   :  { %v777_v46 = vpop.f32.mrb[10].mxu1  ;;  %787 = vmatpush3.bf16.msra.mxu1 %v585_v43 }
 0x227   :  { %v508_v47 = vpack.c.bf16 %v777_v46, %v776_v44  ;;  %v475_v48 = vpop.f32.mrb[11].mxu1  ;;  %788 = vmatprep.subr.bf16.mxu1 %v857_v20 }
 0x228   :  { %v507_v50 = vpack.c.bf16 %v475_v48, %v472_v45 }
 0x229   :  { %v580_v54 = vadd.bf16 %v563_v53, %v508_v47 }
 0x22a   :  { %v579_v52 = vadd.bf16 %v558_v51, %v507_v50  ;;  %789 = vmatpush3.bf16.msra.mxu1 %v586_v49 }
 0x22b   :  { %790 = vmatprep.subr.bf16.mxu1 %v857_v20  ;;  %v588_v61 = vmax.bf16 %v856_v5, %v580_v54 }
 0x22c   :  { %v587_v55 = vmax.bf16 %v856_v5, %v579_v52  ;;  %v780_v56 = vpop.f32.mrb[12].mxu1 }
 0x22d   :  { %v488_v57 = vpop.f32.mrb[13].mxu1 }
 0x22e   :  { %v781_v58 = vpop.f32.mrb[14].mxu1  ;;  %791 = vmatpush3.bf16.msra.mxu1 %v587_v55 }
 0x22f   :  { %v510_v59 = vpack.c.bf16 %v781_v58, %v780_v56  ;;  %v491_v60 = vpop.f32.mrb[15].mxu1  ;;  %792 = vmatprep.subr.bf16.mxu1 %v857_v20 }
 0x230   :  { %v509_v62 = vpack.c.bf16 %v491_v60, %v488_v57 }
 0x231   :  { %v582_v2 = vadd.bf16 %v573_v1, %v510_v59 }
 0x232   :  { %v581_v0 = vadd.bf16 %v568_v63, %v509_v62  ;;  %793 = vmatpush3.bf16.msra.mxu1 %v588_v61 }
 0x233   :  { %794 = vmatprep.subr.bf16.mxu1 %v857_v20  ;;  %v590_v4 = vmax.bf16 %v856_v5, %v582_v2 }
 0x234   :  { %v589_v3 = vmax.bf16 %v856_v5, %v581_v0 }
 0x236   :  { %795 = vmatpush3.bf16.msra.mxu1 %v589_v3 }
 0x237   :  { %796 = vmatprep.subr.bf16.mxu1 %v857_v20 }
 0x23a   :  { %797 = vmatpush3.bf16.msra.mxu1 %v590_v4 }
 0x23d   :  { %799 = vmatmul.mubr.bf16.vlgmr.msra.gmra.mrb[16].mxu1 %v591_v6 }
 0x310   :  { %v632_v8 = vpop.f32.mrb[16].mxu1 }
 0x311   :  { %v633_v9 = vadd.f32 %v632_v8, %v596_v7  ;;  %v800_v10 = vpop.f32.mrb[17].mxu1 }
 0x312   :  { %v635_v11 = vpop.f32.mrb[18].mxu1 }
 0x313   :  { %638 = vst [vmem:[#allocation2] sm:$0xff] %v633_v9  ;;  %v801_v12 = vpop.f32.mrb[19].mxu1 }
 0x314   :  { %843 = shalt.err (!%p840_p4)
}
 0x315   :  { %s844_s11 = scalar_lea.hbm %s1168_s7, 128 }
 0x316   :  { %p845_p5 = scmp.ne.s32.totalorder %s1168_s7, %s844_s11  ;;  %p848_p6 = scmp.lt.u32.totalorder %s844_s11, %s1168_s7 }
 0x318   :  { %p850_p7 = pnand %p848_p6, %p845_p5 }
 0x31a   :  { %853 = shalt.err (!%p850_p7)
}
 0x31b   :  { %648 = dma.vmem_to_hbm [thread:$0]  %s646_s0, 128, %s1168_s7, [#allocation3]  }
 0x31c   :  { %854 = dma.done.wait [#allocation3], 128  }
 0x31d   :  { %855 = vsyncadd [#allocation3], 4294967168 }
 0x31e   :  { %652 = vsyncpa [#allocation3], 1 }

</bundles_post_ra>
